<compile_context>
chip_gen: v7x
topology: tpu7x:2x2x1
jax: 0.10.0
libtpu: 0.0.40
codegen_flags: <defaults>
</compile_context>

<pallas_src>
import jax
import jax.numpy as jnp
from jax.experimental import pallas as pl
from jax.experimental.pallas import tpu as pltpu

# Below this many elements the fixed pallas_call launch + DMA setup cost
# (single-digit microseconds) dwarfs the copy itself; since the forward is the
# identity, simply hand the input back.
_MIN_KERNEL_ELEMENTS = 64 * 1024


def _dma_copy_kernel(x_hbm_ref, o_hbm_ref, copy_sem):
    # Identity forward materialized as one whole-array HBM->HBM DMA:
    # no VMEM staging, no grid, works for any shape / dtype / size.
    cp = pltpu.make_async_copy(x_hbm_ref, o_hbm_ref, copy_sem)
    cp.start()
    cp.wait()


def identity_pallas(x, *, min_kernel_elements=_MIN_KERNEL_ELEMENTS):
    """Pallas-backed identity (ParameterModule.forward)."""
    if x.size < min_kernel_elements:
        # Semantic no-op: cheapest possible identity, zero HBM traffic.
        return x

    return pl.pallas_call(
        _dma_copy_kernel,
        out_shape=jax.ShapeDtypeStruct(x.shape, x.dtype),
        in_specs=[pl.BlockSpec(memory_space=pl.ANY)],
        out_specs=pl.BlockSpec(memory_space=pl.ANY),
        scratch_shapes=[pltpu.SemaphoreType.DMA(())],
        compiler_params=pltpu.CompilerParams(has_side_effects=True),
    )(x)


class ParameterModulePallas:
    """JAX/Pallas port of kekas' ParameterModule.

    Holds a lone parameter `val` (state-dict parity only); forward(x) == x.
    """

    def __init__(self, p):
        self.val = p  # registered but unused in forward (matches PyTorch spec)

    def __call__(self, x):
        return identity_pallas(x)


if __name__ == "__main__":
    key = jax.random.PRNGKey(0)
    k_p, k_x, k_big, k_odd = jax.random.split(key, 4)

    # Lone parameter (like nn.Parameter(torch.rand(4, 4))).
    p = jax.random.normal(k_p, (4, 4), dtype=jnp.float32)
    model = ParameterModulePallas(p)

    # Spec-sized input (2, 4, 16, 16): below the cutoff -> identity fast path.
    x = jax.random.normal(k_x, (2, 4, 16, 16), dtype=jnp.float32)
    y = jax.block_until_ready(model(x))
    assert y.shape == x.shape
    assert y.dtype == x.dtype
    assert jnp.array_equal(y, x)

    # Larger, lane-aligned input: exercises the single-DMA Pallas kernel.
    x_big = jax.random.normal(k_big, (256, 512), dtype=jnp.float32)
    y_big = jax.block_until_ready(model(x_big))
    assert y_big.shape == x_big.shape and y_big.dtype == x_big.dtype
    assert jnp.array_equal(y_big, x_big)

    # Larger, NOT (8,128)-aligned input: the DMA path has no layout constraints.
    x_odd = jax.random.normal(k_odd, (257, 513), dtype=jnp.float32)
    y_odd = jax.block_until_ready(identity_pallas(x_odd))
    assert jnp.array_equal(y_odd, x_odd)

    print("KERNEL_OK")
</pallas_src>

<mosaic_0001>
module attributes {stable_mosaic.version = 11 : i64} {
  func.func @_dma_copy_kernel(%arg0: memref<256x512xf32, #tpu.memory_space<any>>, %arg1: memref<256x512xf32, #tpu.memory_space<any>>, %arg2: memref<!tpu.dma_semaphore, #tpu.memory_space<semaphore_mem>>) attributes {dimension_semantics = [], scalar_prefetch = 0 : i64, scratch_operands = 1 : i64, tpu.core_type = #tpu.core_type<tc>} {
    tpu.enqueue_dma source(%arg0 : memref<256x512xf32, #tpu.memory_space<any>>) target(%arg1 : memref<256x512xf32, #tpu.memory_space<any>>) target_semaphore(%arg2 : memref<!tpu.dma_semaphore, #tpu.memory_space<semaphore_mem>>)
    tpu.wait_dma2 semaphore(%arg2 : memref<!tpu.dma_semaphore, #tpu.memory_space<semaphore_mem>>) src(%arg0 : memref<256x512xf32, #tpu.memory_space<any>>) dst(%arg1 : memref<256x512xf32, #tpu.memory_space<any>>)
    return
  }
}

</mosaic_0001>

<bundles_post_ra>
// kernel: tpu_custom_call.1
= control target key start
LH: loop header
LB: loop body
LE: loop exit
PB: predicated region body
PF: predicated region fallthrough
CT: control target
= control target key end

     0   :  { %s35_s6 = smov [#allocation2]   ;;  %s36_s7 = smov [#allocation3]   ;;  %s54_s0 = inlined_call_operand.hbm [shape: f32[256,512], index: 0, kind: input, shape index: {}]   ;;  %s55_s1 = inlined_call_operand.hbm [shape: f32[256,512], index: 1, kind: output, shape index: {}]  }
   0x1   :  { %s37_s8 = smov 0  }
   0x2   :  { %18 = dma.general %s54_s0, 16384, %s55_s1, %s35_s6, %s36_s7, [#allocation4], %s37_s8, 0  }
   0x3   :  { %33 = dma.done.wait [#allocation2], 16384 }
   0x4   :  { %34 = vsyncadd [#allocation2], 4294950912 }
   0x5   :  { %23 = vsyncmov [#allocation2] }
   0x8   :  { %s24_s13 = vpop.sfrf %23 }
   0x9   :  { %p29_p0 = scmp.ne.s32.totalorder %s24_s13, 0 }
   0xb   :  { %28 = shalt.err (%p29_p0)  }

</bundles_post_ra>
